<compile_context>
chip_gen: v5e
topology: v5e:2x2
jax: 0.10.0
libtpu: 0.0.40
codegen_flags: <defaults>
</compile_context>

<pallas_src>
import jax
import jax.numpy as jnp
from jax.experimental import pallas as pl
from jax.experimental.pallas import tpu as pltpu

_MIB = 1024 * 1024


def _round_down(x, m):
    return (x // m) * m


def _round_up(x, m):
    return ((x + m - 1) // m) * m


def _transition_kernel(x_ref, w_ref, s_ref, b_ref, o_ref):
    # x_ref: (BN, C_in, TP)  activations in native dtype (cast per-block below)
    # w_ref: (TC, C_in)      bf16 conv weight (unscaled)
    # s_ref: (TC, 1)         f32 BN scale  (gamma / sqrt(var + eps))
    # b_ref: (TC, 1)         f32 BN bias   (beta - mean * scale)
    # o_ref: (BN, TC, TP)
    w = w_ref[...]
    s = s_ref[...]
    b = b_ref[...]
    for i in range(x_ref.shape[0]):          # static unroll over images in block
        xb = x_ref[i].astype(w.dtype)        # in-kernel cast: no extra HBM pass
        y = jnp.dot(w, xb, preferred_element_type=jnp.float32)   # MXU, f32 acc
        o_ref[i] = jnp.maximum(y * s + b, 0.0).astype(o_ref.dtype)


def transition_forward(x_nchw, conv_w, bn_gamma, bn_beta, bn_mean, bn_var,
                       eps=1e-5, compute_dtype=jnp.bfloat16, out_dtype=None):
    """x_nchw: (N, C_in, H, W); conv_w: (C_out, C_in, 1, 1) (PyTorch layout)."""
    N, C_in, H, W = x_nchw.shape
    C_out = conv_w.shape[0]
    P = H * W
    out_dtype = x_nchw.dtype if out_dtype is None else out_dtype
    x_bytes = jnp.dtype(x_nchw.dtype).itemsize
    out_bytes = jnp.dtype(out_dtype).itemsize
    w_bytes = jnp.dtype(compute_dtype).itemsize

    # ---- inference-BN as per-channel scale/bias, applied in the f32 epilogue --
    scale_v = bn_gamma.astype(jnp.float32) / jnp.sqrt(bn_var.astype(jnp.float32) + eps)
    bias_v = bn_beta.astype(jnp.float32) - bn_mean.astype(jnp.float32) * scale_v
    scale = scale_v.reshape(C_out, 1)
    bias = bias_v.reshape(C_out, 1)
    w2d = conv_w.reshape(C_out, C_in).astype(compute_dtype)     # bf16, unscaled

    # ---- NCHW consumed directly (reshape is contiguous / free; native dtype) --
    x = x_nchw.reshape(N, C_in, P)

    # ---- VMEM budget from the actual chip (v7x: 64 MiB, v5e/v6e: 128 MiB) -----
    try:
        info = pltpu.get_tpu_info()
        vmem_cap = int(getattr(info, "vmem_capacity_bytes", 64 * _MIB))
    except Exception:
        vmem_cap = 64 * _MIB                       # conservative (v7x) fallback
    vmem_limit = max(32 * _MIB, min(vmem_cap - 24 * _MIB, (3 * vmem_cap) // 4))
    budget = vmem_limit - 6 * _MIB                 # headroom for internal scratch

    def step_bytes(bn, tco, tp):
        x_blk = 2 * bn * C_in * tp * x_bytes       # input, double-buffered
        o_blk = 2 * bn * tco * tp * out_bytes      # output, double-buffered
        w_blk = 2 * tco * C_in * w_bytes           # weight, double-buffered
        sb_blk = 2 * 2 * tco * 128 * 4             # scale+bias, lane-padded f32
        acc = bn * tco * tp * 4                    # f32 matmul/epilogue temp
        return x_blk + o_blk + w_blk + sb_blk + acc

    # ---- C_out tiling: only if even a minimal step would not fit --------------
    tile_co = C_out
    while tile_co > 8 and step_bytes(1, tile_co, min(P, 128)) > budget:
        tile_co = max(8, _round_up(tile_co // 2, 8))
    n_co = pl.cdiv(C_out, tile_co)

    # ---- pixel tiling / image batching from the (corrected) VMEM budget -------
    fixed = 2 * tile_co * C_in * w_bytes + 2 * 2 * tile_co * 128 * 4
    per_col = 2 * C_in * x_bytes + 2 * tile_co * out_bytes + tile_co * 4
    avail = max(budget - fixed, per_col * 128)
    tile_p_budget = max(128, _round_down(avail // per_col, 128))

    if P <= min(tile_p_budget, 4096):
        # whole image per step; batch several images to amortize step overhead
        tile_p = P
        bn = int(max(1, min(N, 8, avail // (per_col * P))))
        while N % bn != 0:                         # keep batch blocks exact
            bn -= 1
    else:
        bn = 1
        tile_p = max(128, min(tile_p_budget, 4096, _round_up(P, 128)))

    n_b = pl.cdiv(N, bn)
    n_p = pl.cdiv(P, tile_p)

    # ---- guarantee >=2 grid points so both TensorCores get work (v7x) ---------
    if n_b * n_p * n_co == 1:
        if bn >= 2:
            bn = bn // 2
            while N % bn != 0:
                bn -= 1
            n_b = pl.cdiv(N, bn)
        elif P >= 256:
            tile_p = max(128, _round_up(pl.cdiv(P, 2), 128))
            n_p = pl.cdiv(P, tile_p)

    # c innermost: the X block index (b, 0, p) is constant across c, so X is
    # never re-DMA'd when C_out is tiled. All axes write disjoint output blocks.
    grid = (n_b, n_p, n_co)

    cost = pl.CostEstimate(
        flops=2 * N * P * C_in * C_out,
        transcendentals=0,
        bytes_accessed=(N * C_in * P * x_bytes + C_out * C_in * w_bytes
                        + 2 * C_out * 4 + N * C_out * P * out_bytes),
    )

    out = pl.pallas_call(
        _transition_kernel,
        out_shape=jax.ShapeDtypeStruct((N, C_out, P), out_dtype),
        grid_spec=pltpu.PrefetchScalarGridSpec(
            num_scalar_prefetch=0,
            grid=grid,
            in_specs=[
                pl.BlockSpec((bn, C_in, tile_p), lambda b, p, c: (b, 0, p)),
                pl.BlockSpec((tile_co, C_in), lambda b, p, c: (c, 0)),
                pl.BlockSpec((tile_co, 1), lambda b, p, c: (c, 0)),
                pl.BlockSpec((tile_co, 1), lambda b, p, c: (c, 0)),
            ],
            out_specs=pl.BlockSpec((bn, tile_co, tile_p),
                                   lambda b, p, c: (b, c, p)),
        ),
        compiler_params=pltpu.CompilerParams(
            dimension_semantics=("parallel", "parallel", "parallel"),
            vmem_limit_bytes=int(vmem_limit),
        ),
        cost_estimate=cost,
    )(x, w2d, scale, bias)

    # (N, C_out, H*W) -> (N, C_out, H, W): contiguous, free.
    return out.reshape(N, C_out, H, W)


if __name__ == "__main__":
    key = jax.random.PRNGKey(0)
    k_x, k_w, k_g, k_b, k_m, k_v = jax.random.split(key, 6)

    N, C_in, H, W = 2, 4, 16, 16
    C_out = 8

    x = jax.random.normal(k_x, (N, C_in, H, W), dtype=jnp.float32)
    conv_w = jax.random.normal(k_w, (C_out, C_in, 1, 1), dtype=jnp.float32) * 0.1
    bn_gamma = 1.0 + 0.1 * jax.random.normal(k_g, (C_out,), dtype=jnp.float32)
    bn_beta = 0.1 * jax.random.normal(k_b, (C_out,), dtype=jnp.float32)
    bn_mean = 0.1 * jax.random.normal(k_m, (C_out,), dtype=jnp.float32)
    bn_var = jnp.abs(jax.random.normal(k_v, (C_out,), dtype=jnp.float32)) + 0.5

    out = transition_forward(x, conv_w, bn_gamma, bn_beta, bn_mean, bn_var)
    jax.block_until_ready(out)

    # Pure-JAX f32 reference (same inference-BN semantics as PyTorch eval()).
    ref = jnp.einsum("nchw,oc->nohw", x, conv_w.reshape(C_out, C_in))
    s = bn_gamma / jnp.sqrt(bn_var + 1e-5)
    b = bn_beta - bn_mean * s
    ref = jnp.maximum(ref * s[None, :, None, None] + b[None, :, None, None], 0.0)
    assert out.shape == ref.shape
    # bf16 matmul operands + f32 accumulation/epilogue -> loose tolerance.
    assert jnp.allclose(out.astype(jnp.float32), ref, atol=2e-2, rtol=2e-2)

    print("KERNEL_OK")
</pallas_src>

<mosaic_0001>
module attributes {stable_mosaic.version = 11 : i64} {
  func.func @_transition_kernel(%arg0: i32, %arg1: i32, %arg2: i32, %arg3: memref<1x4x256xf32, #tpu.memory_space<vmem>>, %arg4: memref<8x4xbf16, #tpu.memory_space<vmem>>, %arg5: memref<8x1xf32, #tpu.memory_space<vmem>>, %arg6: memref<8x1xf32, #tpu.memory_space<vmem>>, %arg7: memref<1x8x256xf32, #tpu.memory_space<vmem>>) attributes {dimension_semantics = [#tpu.dimension_semantics<parallel>, #tpu.dimension_semantics<parallel>, #tpu.dimension_semantics<parallel>], iteration_bounds = array<i64: 2, 1, 1>, scalar_prefetch = 0 : i64, scratch_operands = 0 : i64, tpu.core_type = #tpu.core_type<tc>, window_params = [{transform_indices = @transform_0, window_bounds = array<i64: 1, 4, 256>}, {transform_indices = @transform_1, window_bounds = array<i64: 8, 4>}, {transform_indices = @transform_2, window_bounds = array<i64: 8, 1>}, {transform_indices = @transform_3, window_bounds = array<i64: 8, 1>}, {transform_indices = @transform_4, window_bounds = array<i64: 1, 8, 256>}]} {
    %c0 = arith.constant 0 : index
    %c0_0 = arith.constant 0 : index
    %0 = vector.load %arg4[%c0, %c0_0] : memref<8x4xbf16, #tpu.memory_space<vmem>>, vector<8x4xbf16>
    %c0_1 = arith.constant 0 : index
    %c0_2 = arith.constant 0 : index
    %1 = vector.load %arg5[%c0_1, %c0_2] : memref<8x1xf32, #tpu.memory_space<vmem>>, vector<8x1xf32>
    %c0_3 = arith.constant 0 : index
    %c0_4 = arith.constant 0 : index
    %2 = vector.load %arg6[%c0_3, %c0_4] : memref<8x1xf32, #tpu.memory_space<vmem>>, vector<8x1xf32>
    %c0_5 = arith.constant 0 : index
    %c0_6 = arith.constant 0 : index
    %c0_7 = arith.constant 0 : index
    %3 = vector.load %arg3[%c0_5, %c0_6, %c0_7] : memref<1x4x256xf32, #tpu.memory_space<vmem>>, vector<1x4x256xf32>
    %4 = vector.shape_cast %3 : vector<1x4x256xf32> to vector<4x256xf32>
    %5 = arith.truncf %4 : vector<4x256xf32> to vector<4x256xbf16>
    %cst = arith.constant dense<0.000000e+00> : vector<8x256xf32>
    %6 = tpu.matmul %0, %5, %cst {dimension_numbers = #tpu.dot_dimension_numbers<[1], [0], [0], [1], [0, 0, 1, 1], [], []>} : vector<8x4xbf16>, vector<4x256xbf16>, vector<8x256xf32> -> vector<8x256xf32>
    %7 = vector.broadcast %1 : vector<8x1xf32> to vector<8x256xf32>
    %8 = arith.mulf %6, %7 : vector<8x256xf32>
    %9 = vector.broadcast %2 : vector<8x1xf32> to vector<8x256xf32>
    %10 = arith.addf %8, %9 : vector<8x256xf32>
    %cst_8 = arith.constant 0.000000e+00 : f32
    %11 = vector.broadcast %cst_8 : f32 to vector<8x256xf32>
    %12 = arith.maximumf %10, %11 : vector<8x256xf32>
    %c0_9 = arith.constant 0 : index
    %c0_10 = arith.constant 0 : index
    %c0_11 = arith.constant 0 : index
    %13 = vector.load %arg7[%c0_9, %c0_10, %c0_11] : memref<1x8x256xf32, #tpu.memory_space<vmem>>, vector<1x8x256xf32>
    %14 = vector.shape_cast %13 : vector<1x8x256xf32> to vector<8x256xf32>
    %15 = vector.shape_cast %12 : vector<8x256xf32> to vector<1x8x256xf32>
    tpu.vector_store %arg7[%c0_9, %c0_10, %c0_11], %15 {strides = array<i32>} : memref<1x8x256xf32, #tpu.memory_space<vmem>>, vector<1x8x256xf32>,
    return
  }
  func.func @transform_0(%arg0: i32, %arg1: i32, %arg2: i32) -> (i32, i32, i32) {
    %c0_i32 = arith.constant 0 : i32
    %c0_i32_0 = arith.constant 0 : i32
    return %arg0, %c0_i32, %arg1 : i32, i32, i32
  }
  func.func @transform_1(%arg0: i32, %arg1: i32, %arg2: i32) -> (i32, i32) {
    %c0_i32 = arith.constant 0 : i32
    %c0_i32_0 = arith.constant 0 : i32
    return %arg2, %c0_i32 : i32, i32
  }
  func.func @transform_2(%arg0: i32, %arg1: i32, %arg2: i32) -> (i32, i32) {
    %c0_i32 = arith.constant 0 : i32
    %c0_i32_0 = arith.constant 0 : i32
    return %arg2, %c0_i32 : i32, i32
  }
  func.func @transform_3(%arg0: i32, %arg1: i32, %arg2: i32) -> (i32, i32) {
    %c0_i32 = arith.constant 0 : i32
    %c0_i32_0 = arith.constant 0 : i32
    return %arg2, %c0_i32 : i32, i32
  }
  func.func @transform_4(%arg0: i32, %arg1: i32, %arg2: i32) -> (i32, i32, i32) {
    %c0_i32 = arith.constant 0 : i32
    return %arg0, %arg2, %arg1 : i32, i32, i32
  }
}

</mosaic_0001>

<bundles_post_ra>
// kernel: tpu_custom_call.1
= control target key start
LH: loop header
LB: loop body
LE: loop exit
PB: predicated region body
PF: predicated region fallthrough
CT: control target
= control target key end

     0   :  { %9 = vsyncpa [#allocation3], 0  ;;  %s791_s0 = inlined_call_operand.vmem [shape: f32[2,4,256], index: 0, kind: input, shape index: {}]   ;;  %s792_s1 = inlined_call_operand.vmem [shape: bf16[8,4], index: 1, kind: input, shape index: {}]   ;;  %s793_s2 = inlined_call_operand.vmem [shape: f32[8,1], index: 2, kind: input, shape index: {}]   ;;  %s794_s3 = inlined_call_operand.vmem [shape: f32[8,1], index: 3, kind: input, shape index: {}]   ;;  %s795_s4 = inlined_call_operand.hbm [shape: f32[2,8,256], index: 4, kind: output, shape index: {}]  }
   0x1   :  { %11 = vsyncpa [#allocation3 + $0x1], 0  ;;  %s685_s15 = smov 0   ;;  %s687_s16 = smov 0  }
   0x2   :  { %s689_s17 = smov 0   ;;  %s691_s18 = smov 0  }
   0x3   :  { %s693_s19 = smov 0   ;;  %s695_s20 = smov 0  }
   0x4 LB: > { %s502_s21 = sadd.s32 4294967295, %s657_s20   ;;  %s503_s22 = sadd.s32 4294967294, %s657_s20   ;;  %s657_s20 = sphi %s695_s20, %s17_s20   ;;  %s653_s19 = sphi %s693_s19, %s802_s19   ;;  %s649_s18 = sphi %s691_s18, %s801_s18   ;;  %s645_s17 = sphi %s689_s17, %s800_s17   ;;  %s641_s16 = sphi %s687_s16, %s799_s16   ;;  %s637_s15 = sphi %s685_s15, %s798_s15  }
   0x5   : > { %s36_s23 = sadd.s32 1, %s653_s19  ;;  %s153_s24 = sadd.s32 1, %s645_s17 }
   0x6   : > { %p38_p0 = scmp.ge.s32.totalorder %s36_s23, 2  ;;  %p163_p1 = scmp.ne.s32.totalorder %s645_s17, %s641_s16 }
   0x7   : > { %p164_p2 = scmp.eq.s32.totalorder %s502_s21, 1  ;;  %p169_p3 = scmp.ne.s32.totalorder %s641_s16, %s637_s15 }
   0x8   : > { %s804_s23 = smov (%p38_p0, %s36_s23), 0  ;;  %p170_p5 = scmp.eq.s32.totalorder %s503_s22, 1 }
   0x9   : > { %p725_p4 = por %p164_p2, %p163_p1  ;;  %s146_s26 = ssub.s32 %s653_s19, %s804_s23 }
   0xa   : > { %p509_p6 = scmp.ge.s32.totalorder %s657_s20, 1  ;;  %p151_p7 = scmp.eq.s32.totalorder %s146_s26, 0 }
   0xb   : > { %p732_p8 = por %p170_p5, %p169_p3  ;;  %p222_p9 = scmp.lt.s32.totalorder %s657_s20, 3 }
   0xc   : > { %s738_s28 = scalar_select %p151_p7, %s645_s17, %s153_s24  }
   0xd   : > { %p223_p10 = pnand %p509_p6, %p222_p9 }
   0xe   : > { %p265_p11 = scmp.lt.s32.totalorder (!%p223_p10), %s649_s18, 1  ;;  %s261_s14 = sand.u32 (!%p223_p10), 1, %s641_s16  }
   0xf   : > { %226 = sbr.rel (%p223_p10) target bundleno = 175 (0xaf), region = 36  ;;  %s510_s21 = sshll.u32 (!%p223_p10), %s261_s14, 4 }
  0x10   : > { %s521_s22 = sshll.u32 (!%p223_p10), %s649_s18, 4  ;;  %s263_s30 = scalar_lea.vmem (!%p223_p10), [#allocation2], %s510_s21 }
  0x11   : > { %s371_s29 = scalar_lea.hbm (!%p223_p10), %s795_s4, %s521_s22  ;;  %s599_s11 = scalar_lea.hbm (!%p223_p10), %s795_s4, 32 }
  0x14   : > { %v289_v0 = vld [vmem:[%s793_s2] sm:$0xff]  ;;  %v659_v1 = vmov 0   ;;  %s266_s5 = scalar_select %p265_p11, %s649_s18, 1  ;;  %vm304_vm0 = vcmask 1041408   ;;  %vm300_vm1 = vcmask 31744  }
  0x15   : > { %578 = vset.pattern.permute.xlu0 %v659_v1  ;;  %v290_v3 = vld [vmem:[%s794_s3] sm:$0xff]  ;;  %s356_s18 = scalar_lea.sflag [#allocation3], %s261_s14 }
  0x16   : > { %339 = vperm.xlu0 %578, %v289_v0   ;;  %s520_s6 = sshll.u32 %s266_s5, 3  ;;  %v288_v10 = vld [vmem:[%s792_s1] sm:$0xf]  ;;  %s373_s5 = sshll.u32 %s263_s30, 4  ;;  %s374_s5 = int_to_ptr.vmem [resolvable:$true] %s373_s5 }
  0x17   : > { %s272_s9 = scalar_lea.vmem %s791_s0, %s520_s6  ;;  %s375_s6 = sshll.u32 %s371_s29, 4  ;;  %s376_s6 = int_to_ptr.hbm [resolvable:$true] %s375_s6 }
  0x18   : > { %v291_v2 = vld [vmem:[%s272_s9] sm:$0xff]  ;;  %s593_s7 = sshra.s32 %s376_s6, 4  ;;  %s594_s7 = int_to_ptr.hbm [resolvable:$true] %s593_s7 }
  0x19   : > { %293 = vst [vmem:[#allocation1] ss:$2 sm:$0xff] %v291_v2  ;;  %s595_s8 = scalar_lea.hbm %s594_s7, 16  ;;  %p600_p1 = scmp.lt.s32.totalorder %s594_s7, %s795_s4 }
  0x1a   : > { %p596_p12 = scmp.ne.s32.totalorder %s594_s7, %s595_s8  ;;  %p601_p2 = scmp.lt.s32.totalorder %s599_s11, %s595_s8 }
  0x1c   : > { %p597_p13 = pnand %p596_p12, %p725_p4  ;;  %p602_p3 = por %p601_p2, %p600_p1 }
  0x1e   : > { %346 = vperm.xlu0 %578, %v290_v3   ;;  %p598_p0 = pneg %p597_p13 }
  0x20   : > { %v294_v4 = vld.sshfl [vmem:[#allocation1] sm:$0xff pattern:$0x75316420]  ;;  %v295_v5 = vld.sshfl [vmem:[#allocation1 + $0x8] sm:$0xff pattern:$0x75316420]  ;;  %p603_p5 = pnand %p602_p3, %p598_p0 }
  0x21   : > { %v298_v6 = vpack.c.bf16 %v294_v4, %v294_v4  ;;  %v299_v7 = vpack.c.bf16 %v295_v5, %v295_v5 }
  0x23   : > { %v306_v8 = vsel %vm304_vm0, %v298_v6, 0  ;;  %v309_v9 = vsel %vm304_vm0, %v299_v7, 0 }
  0x24   : > { %318 = vmatpush.bf16.msra.mxu0 %v306_v8  ;;  %331 = vmatpush.bf16.msra.mxu1 %v309_v9 }
  0x27   : > { %513 = vmatmul.msk.bf16.vlgmr.msra.gmra.mxu0 %vm300_vm1, %v288_v10  ;;  %514 = vmatmul.msk.bf16.vlgmr.msra.gmra.mxu1 %vm300_vm1, %v288_v10 }
  0x88   : > { %v340_v11 = vpop.permute.xlu0 %339 }
  0x90   : > { %v347_v16 = vpop.permute.xlu0 %346 }
  0xa4   : > { %v320_v12 = vpop.f32.mrf.mxu0  ;;  %v333_v13 = vpop.f32.mrf.mxu1 }
  0xa5   : > { %v342_v14 = vmul.f32 %v340_v11, %v320_v12  ;;  %v343_v15 = vmul.f32 %v340_v11, %v333_v13 }
  0xa7   : > { %v349_v17 = vadd.f32 %v347_v16, %v342_v14  ;;  %v350_v18 = vadd.f32 %v347_v16, %v343_v15 }
  0xa9   : > { %v351_v19 = vmax.f32 %v349_v17, 0.0  ;;  %v352_v20 = vmax.f32 %v350_v18, 0.0 }
  0xab   : > { %353 = vst [vmem:[%s263_s30] sm:$0xff] %v351_v19 }
  0xac   : > { %354 = vst [vmem:[%s263_s30 + $0x8] sm:$0xff] %v352_v20  ;;  %v322_v21 = vpop.f32.mrf.mxu0  ;;  %v335_v22 = vpop.f32.mrf.mxu1 }
  0xad   : > { %606 = shalt.err (!%p603_p5)
}
  0xae   : > { %522 = dma.vmem_to_hbm [thread:$0]  (%p725_p4), %s374_s5, 256, %s376_s6, %s356_s18  }
  0xaf PF: > { %p528_p6 = scmp.ge.s32.totalorder %s657_s20, 2  ;;  %s387_s14 = sand.u32 1, %s637_s15  }
  0xb0   : > { %s388_s21 = scalar_lea.sflag [#allocation3], %s387_s14 }
  0xb1   : > { %p525_p7 = pnand %p528_p6, %p732_p8 }
  0xb3   : > { %p526_p9 = pneg %p525_p7 }
  0xb5   : > { %632 = dma.done.wait (%p526_p9), %s388_s21, 256  }
  0xb6   : > { %634 = vsyncadd (%p526_p9), %s388_s21, 4294967040  ;;  %s17_s20 = sadd.s32 1, %s657_s20   ;;  %s798_s15 = smov %s641_s16 }
  0xb7   : > { %p14_p10 = scmp.ge.s32.totalorder %s17_s20, 4   ;;  %s799_s16 = smov %s645_s17 }
  0xb8   : > { %s800_s17 = smov %s738_s28  ;;  %s801_s18 = smov %s653_s19 }
  0xb9   : > { %s802_s19 = smov %s804_s23  ;;  %16 = sbr.rel (!%p14_p10) target bundleno = 4 (0x4), region = 80 }
  0xbe   :  { %394 = vsyncpa [#allocation3], 1 }
  0xbf   :  { %396 = vsyncpa [#allocation3 + $0x1], 1 }

</bundles_post_ra>
